<compile_context>
chip_gen: v7x
topology: tpu7x:2x2x1
jax: 0.10.0
libtpu: 0.0.40
codegen_flags: <defaults>
</compile_context>

<pallas_src>
import functools

import numpy as np
import jax
import jax.numpy as jnp
from jax.experimental import pallas as pl
from jax.experimental.pallas import tpu as pltpu


# ----------------------------------------------------------------------------
# Fixed positional encodings (parameter setup, plain numpy glue, built once)
# ----------------------------------------------------------------------------
def _get_1d_sincos_pos_embed_from_grid(embed_dim, pos):
    omega = np.arange(embed_dim // 2, dtype=np.float32) / (embed_dim / 2.0)
    omega = 1.0 / 10000 ** omega
    pos = pos.reshape(-1)
    out = np.einsum("m,d->md", pos, omega)
    return np.concatenate([np.sin(out), np.cos(out)], axis=1)


def get_2d_sincos_pos_embed(embed_dim, grid_size, cls_token=False):
    grid_h = np.arange(grid_size, dtype=np.float32)
    grid_w = np.arange(grid_size, dtype=np.float32)
    grid = np.meshgrid(grid_w, grid_h)  # w first (MAE convention)
    grid = np.stack(grid, axis=0).reshape([2, 1, grid_size, grid_size])
    emb_h = _get_1d_sincos_pos_embed_from_grid(embed_dim // 2, grid[0])
    emb_w = _get_1d_sincos_pos_embed_from_grid(embed_dim // 2, grid[1])
    pos_embed = np.concatenate([emb_h, emb_w], axis=1)
    if cls_token:
        pos_embed = np.concatenate([np.zeros([1, embed_dim]), pos_embed], axis=0)
    return pos_embed.astype(np.float32)


def get_1d_positional_encoding(d_model, max_len):
    # Standard torch-tutorial PositionalEncoding table (added to the input).
    position = np.arange(max_len, dtype=np.float32)[:, None]
    div_term = np.exp(np.arange(0, d_model, 2, dtype=np.float32)
                      * (-np.log(10000.0) / d_model))
    pe = np.zeros((max_len, d_model), dtype=np.float32)
    pe[:, 0::2] = np.sin(position * div_term)
    pe[:, 1::2] = np.cos(position * div_term)
    return pe


# ----------------------------------------------------------------------------
# Pallas kernel: mask-select + (implicit concat) + gather + add pos-enc
# ----------------------------------------------------------------------------
def _revert_kernel(mask_ref, idx_ref, val_ref, mtok_ref, pos_ref, out_ref, *,
                   seq_len, use_select_gather):
    # block shapes:
    #   mask_ref: (1, Bblk, S)    int32   (1 = keep, else mask_token)
    #   idx_ref : (1, Bblk, F)    int32   (revert indices into [0, F))
    #   val_ref : (1, Bblk, S, D) float32
    #   mtok_ref: (1, D)          float32 (mask token)
    #   pos_ref : (1, F, D)       float32 (per-column positional encoding)
    #   out_ref : (1, Bblk, F, D)
    mask = mask_ref[0]                         # (Bblk, S)
    idx = idx_ref[0]                           # (Bblk, F)
    val = val_ref[0]                           # (Bblk, S, D)
    mtok = mtok_ref[...].astype(jnp.float32)   # (1, D)
    pos = pos_ref[0].astype(jnp.float32)       # (F, D)

    S = seq_len

    # step 1: torch.where(remain_mask == 1, val, mask_token)
    masked_val = jnp.where(mask[:, :, None] == 1,
                           val.astype(jnp.float32), mtok[None])        # (Bblk,S,D)

    # steps 2+3: gather along the seq axis; indices >= S address the
    # (implicitly concatenated) mask-token rows.
    idx_e = idx[:, :, None]                                            # (Bblk,F,1)
    acc = jnp.where(idx_e < S, 0.0, mtok[None])                        # (Bblk,F,D)

    if use_select_gather:
        # Small-S path: VPU sum-of-selects, unrolled; no MXU/MRF round-trip.
        for s in range(S):
            acc = acc + jnp.where(idx_e == s, masked_val[:, s:s + 1, :], 0.0)
    else:
        # Large-S path: exact gather as a one-hot matmul on the MXU.
        col_ids = jax.lax.broadcasted_iota(jnp.int32, idx.shape + (S,), 2)
        onehot = (col_ids == idx_e).astype(jnp.float32)                # (Bblk,F,S)
        acc = acc + jnp.einsum("bfs,bsd->bfd", onehot, masked_val,
                               preferred_element_type=jnp.float32)

    # step 4: add positional encoding (dropout is identity in eval mode).
    out_ref[0] = (acc + pos[None]).astype(out_ref.dtype)


def _pick_batch_block(B, S, F, D, itemsize=4, budget_bytes=2 * 1024 * 1024):
    """Largest batch block whose double-buffered tiles stay within a small
    VMEM budget (conservative enough for v7x's 64 MiB physical VMEM)."""
    per_row = (S * D + F * D) * itemsize            # val tile + out tile per row
    cap = max(1, budget_bytes // (2 * per_row))      # x2: double buffering
    if cap >= B:
        return B
    bblk = (cap // 8) * 8                            # keep block layout legal
    while bblk >= 8 and B % bblk:
        bblk -= 8
    return bblk if bblk >= 8 else B


def static_revert_fused(vals, masks, idxs, mask_token, pos_tables, *,
                        batch_block=None, out_dtype=None):
    """All columns of StaticRevert.forward in one pallas_call.

    vals:        (C, B, S, D) float32
    masks:       (C, B, S)    int    (1 = real token)
    idxs:        (C, B, F)    int    (revert indices, values in [0, F))
    mask_token:  (D,)         float32
    pos_tables:  (C, F, D)    float32
    returns:     (C, B, F, D)
    """
    C, B, S, D = vals.shape
    F = idxs.shape[-1]
    assert F >= S
    out_dtype = out_dtype or vals.dtype

    bblk = batch_block or _pick_batch_block(B, S, F, D)
    nb = B // bblk
    assert nb * bblk == B

    kernel = functools.partial(_revert_kernel, seq_len=S,
                               use_select_gather=(S <= 32))

    return pl.pallas_call(
        kernel,
        out_shape=jax.ShapeDtypeStruct((C, B, F, D), out_dtype),
        grid_spec=pltpu.PrefetchScalarGridSpec(
            num_scalar_prefetch=0,
            grid=(C, nb),
            in_specs=[
                pl.BlockSpec((1, bblk, S), lambda c, b: (c, b, 0)),
                pl.BlockSpec((1, bblk, F), lambda c, b: (c, b, 0)),
                pl.BlockSpec((1, bblk, S, D), lambda c, b: (c, b, 0, 0)),
                pl.BlockSpec((1, D), lambda c, b: (0, 0)),
                pl.BlockSpec((1, F, D), lambda c, b: (c, 0, 0)),
            ],
            out_specs=pl.BlockSpec((1, bblk, F, D), lambda c, b: (c, b, 0, 0)),
        ),
        compiler_params=pltpu.CompilerParams(
            dimension_semantics=("parallel", "parallel")),
    )(masks.astype(jnp.int32), idxs.astype(jnp.int32),
      vals.astype(jnp.float32), mask_token.astype(jnp.float32).reshape(1, D),
      pos_tables.astype(jnp.float32))


def static_revert_forward(img_cols, nlp_cols, data_dict, idx_dict, mask_dict,
                          params):
    """Mirrors StaticRevert.forward over its column dicts — fused into a single
    pallas_call. Ragged columns are padded to a common (S, F); padded seq rows
    carry mask=0 (-> mask_token, semantically exact) and padded output rows are
    sliced off afterwards."""
    cols = list(img_cols) + list(nlp_cols)
    s_lens = {c: data_dict[c].shape[1] for c in cols}
    f_lens = {c: idx_dict[f"{c}_revert_idx"].shape[-1] for c in cols}
    S_max, F_max = max(s_lens.values()), max(f_lens.values())

    vals, masks, idxs, pos_tabs = [], [], [], []
    for c in cols:
        s_pad, f_pad = S_max - s_lens[c], F_max - f_lens[c]
        vals.append(jnp.pad(data_dict[c].astype(jnp.float32),
                            ((0, 0), (0, s_pad), (0, 0))))
        masks.append(jnp.pad(
            mask_dict[f"{c}_remain_padding_mask"].astype(jnp.int32),
            ((0, 0), (0, s_pad))))                      # padded rows -> mask_token
        idxs.append(jnp.pad(
            idx_dict[f"{c}_revert_idx"].astype(jnp.int32),
            ((0, 0), (0, f_pad)), constant_values=F_max))  # dummy rows -> mask_token
        pos = params["pos_enc_2d"] if c in img_cols else params["pos_enc_1d"][c]
        pos_tabs.append(jnp.pad(pos.astype(jnp.float32), ((0, f_pad), (0, 0))))

    out = static_revert_fused(jnp.stack(vals), jnp.stack(masks),
                              jnp.stack(idxs), params["mask_token"],
                              jnp.stack(pos_tabs))
    return {f"{c}_revert": out[i, :, :f_lens[c], :] for i, c in enumerate(cols)}


# ----------------------------------------------------------------------------
# Pure-JAX reference (mirrors the PyTorch code) for validation
# ----------------------------------------------------------------------------
def _reference_column(val, remain_mask, revert_idx, mask_token, pos):
    B, S, D = val.shape
    F = revert_idx.shape[-1]
    mtok = mask_token.reshape(1, 1, D)
    v = jnp.where(remain_mask[..., None] == 1, val, mtok)
    pad = jnp.broadcast_to(mtok, (B, F - S, D))
    v = jnp.concatenate([v, pad], axis=1)
    gathered = jnp.take_along_axis(
        v, revert_idx[..., None].astype(jnp.int32), axis=1)
    return gathered + pos[None]


# ----------------------------------------------------------------------------
# main
# ----------------------------------------------------------------------------
if __name__ == "__main__":
    key = jax.random.PRNGKey(0)
    B = 2
    D = 128                       # d_model: multiple of 128 -> lane-dense stores
    patch_size = 56
    grid_size = 224 // patch_size     # 4 -> image full length 16
    F_img, S_img = grid_size * grid_size, 8
    F_nlp, S_nlp = 12, 6              # deliberately ragged vs the image column

    k1, k2, k3, k4, k5, k6, k7 = jax.random.split(key, 7)

    # "parameters": mask token + positional tables, built ONCE at init.
    mask_token = 0.02 * jax.random.normal(k1, (D,), dtype=jnp.float32)
    pos_enc_2d = jnp.asarray(get_2d_sincos_pos_embed(D, grid_size))
    pos_enc_1d_text = jnp.asarray(get_1d_positional_encoding(D, F_nlp))

    # image column inputs
    img_val = jax.random.normal(k2, (B, S_img, D), dtype=jnp.float32)
    img_mask = jax.random.bernoulli(k3, 0.7, (B, S_img)).astype(jnp.int32)
    img_idx = jnp.stack(
        [jax.random.permutation(jax.random.fold_in(k4, b), F_img)
         for b in range(B)]).astype(jnp.int32)

    # nlp column inputs
    nlp_val = jax.random.normal(k5, (B, S_nlp, D), dtype=jnp.float32)
    nlp_mask = jax.random.bernoulli(k6, 0.7, (B, S_nlp)).astype(jnp.int32)
    nlp_idx = jnp.stack(
        [jax.random.permutation(jax.random.fold_in(k7, b), F_nlp)
         for b in range(B)]).astype(jnp.int32)

    params = {"mask_token": mask_token,
              "pos_enc_2d": pos_enc_2d,
              "pos_enc_1d": {"text": pos_enc_1d_text}}

    img_cols, nlp_cols = ["image"], ["text"]
    data_dict = {"image": img_val, "text": nlp_val}
    mask_dict = {"image_remain_padding_mask": img_mask,
                 "text_remain_padding_mask": nlp_mask}
    idx_dict = {"image_revert_idx": img_idx, "text_revert_idx": nlp_idx}

    out = static_revert_forward(img_cols, nlp_cols, data_dict, idx_dict,
                                mask_dict, params)
    jax.block_until_ready(out)

    # validate against pure-JAX reference
    ref_img = _reference_column(img_val, img_mask, img_idx, mask_token, pos_enc_2d)
    ref_nlp = _reference_column(nlp_val, nlp_mask, nlp_idx, mask_token,
                                pos_enc_1d_text)
    np.testing.assert_allclose(np.asarray(out["image_revert"]),
                               np.asarray(ref_img), rtol=1e-5, atol=1e-5)
    np.testing.assert_allclose(np.asarray(out["text_revert"]),
                               np.asarray(ref_nlp), rtol=1e-5, atol=1e-5)

    print("KERNEL_OK")
</pallas_src>

<mosaic_0001>
module attributes {stable_mosaic.version = 11 : i64} {
  func.func @_revert_kernel(%arg0: i32, %arg1: i32, %arg2: memref<1x2x8xi32, #tpu.memory_space<vmem>>, %arg3: memref<1x2x16xi32, #tpu.memory_space<vmem>>, %arg4: memref<1x2x8x128xf32, #tpu.memory_space<vmem>>, %arg5: memref<1x128xf32, #tpu.memory_space<vmem>>, %arg6: memref<1x16x128xf32, #tpu.memory_space<vmem>>, %arg7: memref<1x2x16x128xf32, #tpu.memory_space<vmem>>) attributes {dimension_semantics = [#tpu.dimension_semantics<parallel>, #tpu.dimension_semantics<parallel>], iteration_bounds = array<i64: 2, 1>, scalar_prefetch = 0 : i64, scratch_operands = 0 : i64, tpu.core_type = #tpu.core_type<tc>, window_params = [{transform_indices = @transform_0, window_bounds = array<i64: 1, 2, 8>}, {transform_indices = @transform_1, window_bounds = array<i64: 1, 2, 16>}, {transform_indices = @transform_2, window_bounds = array<i64: 1, 2, 8, 128>}, {pipeline_mode = #tpu.pipeline_mode<synchronous>, transform_indices = @transform_3, window_bounds = array<i64: 1, 128>}, {transform_indices = @transform_4, window_bounds = array<i64: 1, 16, 128>}, {transform_indices = @transform_5, window_bounds = array<i64: 1, 2, 16, 128>}]} {
    %c0 = arith.constant 0 : index
    %c0_0 = arith.constant 0 : index
    %c0_1 = arith.constant 0 : index
    %0 = vector.load %arg2[%c0, %c0_0, %c0_1] : memref<1x2x8xi32, #tpu.memory_space<vmem>>, vector<1x2x8xi32>
    %1 = vector.shape_cast %0 : vector<1x2x8xi32> to vector<2x8xi32>
    %c0_2 = arith.constant 0 : index
    %c0_3 = arith.constant 0 : index
    %c0_4 = arith.constant 0 : index
    %2 = vector.load %arg3[%c0_2, %c0_3, %c0_4] : memref<1x2x16xi32, #tpu.memory_space<vmem>>, vector<1x2x16xi32>
    %3 = vector.shape_cast %2 : vector<1x2x16xi32> to vector<2x16xi32>
    %c0_5 = arith.constant 0 : index
    %c0_6 = arith.constant 0 : index
    %c0_7 = arith.constant 0 : index
    %c0_8 = arith.constant 0 : index
    %4 = vector.load %arg4[%c0_5, %c0_6, %c0_7, %c0_8] : memref<1x2x8x128xf32, #tpu.memory_space<vmem>>, vector<1x2x8x128xf32>
    %5 = vector.shape_cast %4 : vector<1x2x8x128xf32> to vector<2x8x128xf32>
    %c0_9 = arith.constant 0 : index
    %c0_10 = arith.constant 0 : index
    %6 = vector.load %arg5[%c0_9, %c0_10] : memref<1x128xf32, #tpu.memory_space<vmem>>, vector<1x128xf32>
    %c0_11 = arith.constant 0 : index
    %c0_12 = arith.constant 0 : index
    %c0_13 = arith.constant 0 : index
    %7 = vector.load %arg6[%c0_11, %c0_12, %c0_13] : memref<1x16x128xf32, #tpu.memory_space<vmem>>, vector<1x16x128xf32>
    %8 = vector.shape_cast %7 : vector<1x16x128xf32> to vector<16x128xf32>
    %9 = vector.shape_cast %1 : vector<2x8xi32> to vector<2x8x1xi32>
    %c1_i32 = arith.constant 1 : i32
    %10 = vector.broadcast %c1_i32 : i32 to vector<2x8x1xi32>
    %11 = arith.cmpi eq, %9, %10 : vector<2x8x1xi32>
    %12 = vector.shape_cast %6 : vector<1x128xf32> to vector<1x1x128xf32>
    %13 = vector.shape_cast %11 : vector<2x8x1xi1> to vector<2x8x1xi1>
    %14 = vector.broadcast %13 : vector<2x8x1xi1> to vector<2x8x128xi1>
    %15 = vector.shape_cast %12 : vector<1x1x128xf32> to vector<1x1x128xf32>
    %16 = vector.broadcast %15 : vector<1x1x128xf32> to vector<2x8x128xf32>
    %17 = arith.select %14, %5, %16 : vector<2x8x128xi1>, vector<2x8x128xf32>
    %18 = vector.shape_cast %3 : vector<2x16xi32> to vector<2x16x1xi32>
    %c8_i32 = arith.constant 8 : i32
    %19 = vector.broadcast %c8_i32 : i32 to vector<2x16x1xi32>
    %20 = arith.cmpi slt, %18, %19 : vector<2x16x1xi32>
    %21 = vector.shape_cast %6 : vector<1x128xf32> to vector<1x1x128xf32>
    %cst = arith.constant 0.000000e+00 : f32
    %22 = vector.shape_cast %20 : vector<2x16x1xi1> to vector<2x16x1xi1>
    %23 = vector.broadcast %22 : vector<2x16x1xi1> to vector<2x16x128xi1>
    %24 = vector.broadcast %cst : f32 to vector<2x16x128xf32>
    %25 = vector.shape_cast %21 : vector<1x1x128xf32> to vector<1x1x128xf32>
    %26 = vector.broadcast %25 : vector<1x1x128xf32> to vector<2x16x128xf32>
    %27 = arith.select %23, %24, %26 : vector<2x16x128xi1>, vector<2x16x128xf32>
    %c0_i32 = arith.constant 0 : i32
    %28 = vector.broadcast %c0_i32 : i32 to vector<2x16x1xi32>
    %29 = arith.cmpi eq, %18, %28 : vector<2x16x1xi32>
    %30 = vector.extract_strided_slice %17 {offsets = [0, 0, 0], sizes = [2, 1, 128], strides = [1, 1, 1]} : vector<2x8x128xf32> to vector<2x1x128xf32>
    %cst_14 = arith.constant 0.000000e+00 : f32
    %31 = vector.shape_cast %29 : vector<2x16x1xi1> to vector<2x16x1xi1>
    %32 = vector.broadcast %31 : vector<2x16x1xi1> to vector<2x16x128xi1>
    %33 = vector.shape_cast %30 : vector<2x1x128xf32> to vector<2x1x128xf32>
    %34 = vector.broadcast %33 : vector<2x1x128xf32> to vector<2x16x128xf32>
    %35 = vector.broadcast %cst_14 : f32 to vector<2x16x128xf32>
    %36 = arith.select %32, %34, %35 : vector<2x16x128xi1>, vector<2x16x128xf32>
    %37 = arith.addf %27, %36 : vector<2x16x128xf32>
    %c1_i32_15 = arith.constant 1 : i32
    %38 = vector.broadcast %c1_i32_15 : i32 to vector<2x16x1xi32>
    %39 = arith.cmpi eq, %18, %38 : vector<2x16x1xi32>
    %40 = vector.extract_strided_slice %17 {offsets = [0, 1, 0], sizes = [2, 1, 128], strides = [1, 1, 1]} : vector<2x8x128xf32> to vector<2x1x128xf32>
    %cst_16 = arith.constant 0.000000e+00 : f32
    %41 = vector.shape_cast %39 : vector<2x16x1xi1> to vector<2x16x1xi1>
    %42 = vector.broadcast %41 : vector<2x16x1xi1> to vector<2x16x128xi1>
    %43 = vector.shape_cast %40 : vector<2x1x128xf32> to vector<2x1x128xf32>
    %44 = vector.broadcast %43 : vector<2x1x128xf32> to vector<2x16x128xf32>
    %45 = vector.broadcast %cst_16 : f32 to vector<2x16x128xf32>
    %46 = arith.select %42, %44, %45 : vector<2x16x128xi1>, vector<2x16x128xf32>
    %47 = arith.addf %37, %46 : vector<2x16x128xf32>
    %c2_i32 = arith.constant 2 : i32
    %48 = vector.broadcast %c2_i32 : i32 to vector<2x16x1xi32>
    %49 = arith.cmpi eq, %18, %48 : vector<2x16x1xi32>
    %50 = vector.extract_strided_slice %17 {offsets = [0, 2, 0], sizes = [2, 1, 128], strides = [1, 1, 1]} : vector<2x8x128xf32> to vector<2x1x128xf32>
    %cst_17 = arith.constant 0.000000e+00 : f32
    %51 = vector.shape_cast %49 : vector<2x16x1xi1> to vector<2x16x1xi1>
    %52 = vector.broadcast %51 : vector<2x16x1xi1> to vector<2x16x128xi1>
    %53 = vector.shape_cast %50 : vector<2x1x128xf32> to vector<2x1x128xf32>
    %54 = vector.broadcast %53 : vector<2x1x128xf32> to vector<2x16x128xf32>
    %55 = vector.broadcast %cst_17 : f32 to vector<2x16x128xf32>
    %56 = arith.select %52, %54, %55 : vector<2x16x128xi1>, vector<2x16x128xf32>
    %57 = arith.addf %47, %56 : vector<2x16x128xf32>
    %c3_i32 = arith.constant 3 : i32
    %58 = vector.broadcast %c3_i32 : i32 to vector<2x16x1xi32>
    %59 = arith.cmpi eq, %18, %58 : vector<2x16x1xi32>
    %60 = vector.extract_strided_slice %17 {offsets = [0, 3, 0], sizes = [2, 1, 128], strides = [1, 1, 1]} : vector<2x8x128xf32> to vector<2x1x128xf32>
    %cst_18 = arith.constant 0.000000e+00 : f32
    %61 = vector.shape_cast %59 : vector<2x16x1xi1> to vector<2x16x1xi1>
    %62 = vector.broadcast %61 : vector<2x16x1xi1> to vector<2x16x128xi1>
    %63 = vector.shape_cast %60 : vector<2x1x128xf32> to vector<2x1x128xf32>
    %64 = vector.broadcast %63 : vector<2x1x128xf32> to vector<2x16x128xf32>
    %65 = vector.broadcast %cst_18 : f32 to vector<2x16x128xf32>
    %66 = arith.select %62, %64, %65 : vector<2x16x128xi1>, vector<2x16x128xf32>
    %67 = arith.addf %57, %66 : vector<2x16x128xf32>
    %c4_i32 = arith.constant 4 : i32
    %68 = vector.broadcast %c4_i32 : i32 to vector<2x16x1xi32>
    %69 = arith.cmpi eq, %18, %68 : vector<2x16x1xi32>
    %70 = vector.extract_strided_slice %17 {offsets = [0, 4, 0], sizes = [2, 1, 128], strides = [1, 1, 1]} : vector<2x8x128xf32> to vector<2x1x128xf32>
    %cst_19 = arith.constant 0.000000e+00 : f32
    %71 = vector.shape_cast %69 : vector<2x16x1xi1> to vector<2x16x1xi1>
    %72 = vector.broadcast %71 : vector<2x16x1xi1> to vector<2x16x128xi1>
    %73 = vector.shape_cast %70 : vector<2x1x128xf32> to vector<2x1x128xf32>
    %74 = vector.broadcast %73 : vector<2x1x128xf32> to vector<2x16x128xf32>
    %75 = vector.broadcast %cst_19 : f32 to vector<2x16x128xf32>
    %76 = arith.select %72, %74, %75 : vector<2x16x128xi1>, vector<2x16x128xf32>
    %77 = arith.addf %67, %76 : vector<2x16x128xf32>
    %c5_i32 = arith.constant 5 : i32
    %78 = vector.broadcast %c5_i32 : i32 to vector<2x16x1xi32>
    %79 = arith.cmpi eq, %18, %78 : vector<2x16x1xi32>
    %80 = vector.extract_strided_slice %17 {offsets = [0, 5, 0], sizes = [2, 1, 128], strides = [1, 1, 1]} : vector<2x8x128xf32> to vector<2x1x128xf32>
    %cst_20 = arith.constant 0.000000e+00 : f32
    %81 = vector.shape_cast %79 : vector<2x16x1xi1> to vector<2x16x1xi1>
    %82 = vector.broadcast %81 : vector<2x16x1xi1> to vector<2x16x128xi1>
    %83 = vector.shape_cast %80 : vector<2x1x128xf32> to vector<2x1x128xf32>
    %84 = vector.broadcast %83 : vector<2x1x128xf32> to vector<2x16x128xf32>
    %85 = vector.broadcast %cst_20 : f32 to vector<2x16x128xf32>
    %86 = arith.select %82, %84, %85 : vector<2x16x128xi1>, vector<2x16x128xf32>
    %87 = arith.addf %77, %86 : vector<2x16x128xf32>
    %c6_i32 = arith.constant 6 : i32
    %88 = vector.broadcast %c6_i32 : i32 to vector<2x16x1xi32>
    %89 = arith.cmpi eq, %18, %88 : vector<2x16x1xi32>
    %90 = vector.extract_strided_slice %17 {offsets = [0, 6, 0], sizes = [2, 1, 128], strides = [1, 1, 1]} : vector<2x8x128xf32> to vector<2x1x128xf32>
    %cst_21 = arith.constant 0.000000e+00 : f32
    %91 = vector.shape_cast %89 : vector<2x16x1xi1> to vector<2x16x1xi1>
    %92 = vector.broadcast %91 : vector<2x16x1xi1> to vector<2x16x128xi1>
    %93 = vector.shape_cast %90 : vector<2x1x128xf32> to vector<2x1x128xf32>
    %94 = vector.broadcast %93 : vector<2x1x128xf32> to vector<2x16x128xf32>
    %95 = vector.broadcast %cst_21 : f32 to vector<2x16x128xf32>
    %96 = arith.select %92, %94, %95 : vector<2x16x128xi1>, vector<2x16x128xf32>
    %97 = arith.addf %87, %96 : vector<2x16x128xf32>
    %c7_i32 = arith.constant 7 : i32
    %98 = vector.broadcast %c7_i32 : i32 to vector<2x16x1xi32>
    %99 = arith.cmpi eq, %18, %98 : vector<2x16x1xi32>
    %100 = vector.extract_strided_slice %17 {offsets = [0, 7, 0], sizes = [2, 1, 128], strides = [1, 1, 1]} : vector<2x8x128xf32> to vector<2x1x128xf32>
    %cst_22 = arith.constant 0.000000e+00 : f32
    %101 = vector.shape_cast %99 : vector<2x16x1xi1> to vector<2x16x1xi1>
    %102 = vector.broadcast %101 : vector<2x16x1xi1> to vector<2x16x128xi1>
    %103 = vector.shape_cast %100 : vector<2x1x128xf32> to vector<2x1x128xf32>
    %104 = vector.broadcast %103 : vector<2x1x128xf32> to vector<2x16x128xf32>
    %105 = vector.broadcast %cst_22 : f32 to vector<2x16x128xf32>
    %106 = arith.select %102, %104, %105 : vector<2x16x128xi1>, vector<2x16x128xf32>
    %107 = arith.addf %97, %106 : vector<2x16x128xf32>
    %108 = vector.shape_cast %8 : vector<16x128xf32> to vector<1x16x128xf32>
    %109 = vector.broadcast %108 : vector<1x16x128xf32> to vector<2x16x128xf32>
    %110 = arith.addf %107, %109 : vector<2x16x128xf32>
    %c0_23 = arith.constant 0 : index
    %c0_24 = arith.constant 0 : index
    %c0_25 = arith.constant 0 : index
    %c0_26 = arith.constant 0 : index
    %111 = vector.load %arg7[%c0_23, %c0_24, %c0_25, %c0_26] : memref<1x2x16x128xf32, #tpu.memory_space<vmem>>, vector<1x2x16x128xf32>
    %112 = vector.shape_cast %111 : vector<1x2x16x128xf32> to vector<2x16x128xf32>
    %113 = vector.shape_cast %110 : vector<2x16x128xf32> to vector<1x2x16x128xf32>
    tpu.vector_store %arg7[%c0_23, %c0_24, %c0_25, %c0_26], %113 {strides = array<i32>} : memref<1x2x16x128xf32, #tpu.memory_space<vmem>>, vector<1x2x16x128xf32>,
    return
  }
  func.func @transform_0(%arg0: i32, %arg1: i32) -> (i32, i32, i32) {
    %c0_i32 = arith.constant 0 : i32
    %c0_i32_0 = arith.constant 0 : i32
    return %arg0, %arg1, %c0_i32 : i32, i32, i32
  }
  func.func @transform_1(%arg0: i32, %arg1: i32) -> (i32, i32, i32) {
    %c0_i32 = arith.constant 0 : i32
    %c0_i32_0 = arith.constant 0 : i32
    return %arg0, %arg1, %c0_i32 : i32, i32, i32
  }
  func.func @transform_2(%arg0: i32, %arg1: i32) -> (i32, i32, i32, i32) {
    %c0_i32 = arith.constant 0 : i32
    %c0_i32_0 = arith.constant 0 : i32
    %c0_i32_1 = arith.constant 0 : i32
    return %arg0, %arg1, %c0_i32, %c0_i32_0 : i32, i32, i32, i32
  }
  func.func @transform_3(%arg0: i32, %arg1: i32) -> (i32, i32) {
    %c0_i32 = arith.constant 0 : i32
    %c0_i32_0 = arith.constant 0 : i32
    %c0_i32_1 = arith.constant 0 : i32
    return %c0_i32, %c0_i32_0 : i32, i32
  }
  func.func @transform_4(%arg0: i32, %arg1: i32) -> (i32, i32, i32) {
    %c0_i32 = arith.constant 0 : i32
    %c0_i32_0 = arith.constant 0 : i32
    %c0_i32_1 = arith.constant 0 : i32
    return %arg0, %c0_i32, %c0_i32_0 : i32, i32, i32
  }
  func.func @transform_5(%arg0: i32, %arg1: i32) -> (i32, i32, i32, i32) {
    %c0_i32 = arith.constant 0 : i32
    %c0_i32_0 = arith.constant 0 : i32
    %c0_i32_1 = arith.constant 0 : i32
    return %arg0, %arg1, %c0_i32, %c0_i32_0 : i32, i32, i32, i32
  }
}

</mosaic_0001>

<bundles_post_ra>
// kernel: tpu_custom_call.1
= control target key start
LH: loop header
LB: loop body
LE: loop exit
PB: predicated region body
PF: predicated region fallthrough
CT: control target
= control target key end

     0   :  { %s1641_s0 = inlined_call_operand.hbm [shape: s32[2,2,8], index: 0, kind: input, shape index: {}]   ;;  %s1642_s1 = inlined_call_operand.hbm [shape: s32[2,2,16], index: 1, kind: input, shape index: {}]   ;;  %s1643_s2 = inlined_call_operand.hbm [shape: f32[2,2,8,128], index: 2, kind: input, shape index: {}]   ;;  %s1644_s3 = inlined_call_operand.vmem [shape: f32[1,128], index: 3, kind: input, shape index: {}]   ;;  %s1645_s4 = inlined_call_operand.hbm [shape: f32[2,16,128], index: 4, kind: input, shape index: {}]   ;;  %s1646_s5 = inlined_call_operand.hbm [shape: f32[2,2,16,128], index: 5, kind: output, shape index: {}]  }
   0x1   :  { %1655 = sst [smem:[#allocation19_spill]] %s1642_s1 }
   0x2   :  { %10 = vsyncpa [#allocation3], 0 }
   0x3   :  { %12 = vsyncpa [#allocation3 + $0x1], 0 }
   0x4   :  { %13 = vsyncpa [#allocation6], 0 }
   0x5   :  { %15 = vsyncpa [#allocation6 + $0x1], 0 }
   0x6   :  { %16 = vsyncpa [#allocation9], 0 }
   0x7   :  { %18 = vsyncpa [#allocation9 + $0x1], 0 }
   0x8   :  { %19 = vsyncpa [#allocation4], 0 }
   0x9   :  { %21 = vsyncpa [#allocation4 + $0x1], 0  ;;  %s1218_s18 = smov 0   ;;  %s1220_s19 = smov 0  }
   0xa   :  { %s1222_s20 = smov 0   ;;  %s1224_s21 = smov 0  }
   0xb   :  { %s1226_s22 = smov 0   ;;  %s1228_s23 = smov 0  }
   0xc LB: > { %1656 = sst [smem:[#allocation15_spill]] %s1165_s20  ;;  %s1249_s24 = sadd.s32 4294967295, %s1177_s23   ;;  %s1177_s23 = sphi %s1228_s23, %s27_s23   ;;  %s1173_s22 = sphi %s1226_s22, %s1686_s22   ;;  %s1169_s21 = sphi %s1224_s21, %s1685_s21   ;;  %s1165_s20 = sphi %s1222_s20, %s1681_s20   ;;  %s1161_s19 = sphi %s1220_s19, %s1684_s19   ;;  %s1157_s18 = sphi %s1218_s18, %s1683_s18  }
   0xd   : > { %1657 = sst [smem:[#allocation16_spill]] %s1177_s23  ;;  %s858_s25 = sadd.s32 4294967294, %s1177_s23  }
   0xe   : > { %s39_s26 = sadd.s32 1, %s1173_s22  ;;  %s48_s27 = sadd.s32 1, %s1165_s20 }
   0xf   : > { %p41_p0 = scmp.ge.s32.totalorder %s39_s26, 2  ;;  %p55_p1 = scmp.ne.s32.totalorder %s1165_s20, %s1161_s19 }
  0x10   : > { %p56_p2 = scmp.eq.s32.totalorder %s1177_s23, 0  ;;  %p61_p3 = scmp.ne.s32.totalorder %s1161_s19, %s1157_s18 }
  0x11   : > { %s1688_s26 = smov (%p41_p0, %s39_s26), 0  ;;  %p62_p5 = scmp.eq.s32.totalorder %s1249_s24, 0 }
  0x12   : > { %1658 = sst [smem:[#allocation17_spill]] %s1688_s26  ;;  %p1261_p4 = por %p56_p2, %p55_p1 }
  0x13   : > { %s43_s29 = ssub.s32 %s1173_s22, %s1688_s26  ;;  %p190_p6 = scmp.eq.s32.totalorder %s1249_s24, 1 }
  0x14   : > { %p46_p7 = scmp.eq.s32.totalorder %s43_s29, 0  ;;  %p1269_p8 = por %p62_p5, %p61_p3 }
  0x15   : > { %p1273_p9 = por %p190_p6, %p55_p1  ;;  %p196_p10 = scmp.eq.s32.totalorder %s858_s25, 1 }
  0x16   : > { %s1660_s30 = scalar_select %p1269_p8, 1, 0 }
  0x17   : > { %s1661_s6 = scalar_select %p1273_p9, 1, 0 }
  0x18   : > { %s1278_s7 = scalar_select %p46_p7, %s1165_s20, %s48_s27  }
  0x19   : > { %p1280_p11 = por %p196_p10, %p61_p3  ;;  %p913_p13 = scmp.lt.s32.totalorder %s1177_s23, 2 }
  0x1a   : > { %1662 = sst [smem:[#allocation18_spill]] %s1278_s7  ;;  %s1287_s9 = sand.u32 1, %s1165_s20  }
  0x1b   : > { %s1663_s8 = scalar_select %p1280_p11, 1, 0 }
  0x1c   : > { %s1648_s10 = sshll.u32 %s1287_s9, 1  ;;  %s1649_s11 = sshll.u32 %s1173_s22, 5 }
  0x1d   : > { %p1293_p0 = pnand %p913_p13, %p1261_p4  ;;  %s238_s13 = sand.u32 1, %s1177_s23  }
  0x1e   : > { %s1665_s1 = sld [smem:[#allocation19_spill]]  ;;  %s242_s17 = scalar_lea.vmem [#allocation5], %s1648_s10 }
  0x1f   : > { %s250_s25 = sshll.u32 %s242_s17, 4  ;;  %s1311_s29 = scalar_lea.sflag [#allocation6], %s238_s13  ;;  %s1308_s25 = int_to_ptr.vmem [resolvable:$true] %s250_s25 }
  0x20   : > { %p1317_p2 = pneg %p1293_p0 }
  0x24   : > { %s1303_s16 = scalar_lea.hbm %s1665_s1, %s1649_s11  ;;  %s972_s17 = scalar_lea.hbm %s1665_s1, 64 }
  0x25   : > { %s967_s26 = scalar_lea.hbm %s1303_s16, 32  ;;  %p973_p5 = scmp.lt.u32.totalorder %s1303_s16, %s1665_s1 }
  0x26   : > { %p968_p1 = scmp.ne.s32.totalorder %s1303_s16, %s967_s26  ;;  %p974_p6 = scmp.lt.u32.totalorder %s972_s17, %s967_s26 }
  0x27   : > { %p976_p10 = scmp.lt.u32.totalorder %s967_s26, %s1303_s16 }
  0x28   : > { %p970_p3 = pnand %p1317_p2, %p968_p1  ;;  %p975_p7 = por %p974_p6, %p973_p5 }
  0x2a   : > { %p971_p4 = pneg %p970_p3  ;;  %p977_p13 = por %p976_p10, %p975_p7 }
  0x2c   : > { %p978_p12 = pnand %p977_p13, %p971_p4 }
  0x2e   : > { %981 = shalt.err (!%p978_p12)
}
  0x2f   : > { %s982_s13 = scalar_lea.vmem %s1308_s25, 32  ;;  %s1179_s10 = smov [#allocation5]  }
  0x30   : > { %p983_p1 = scmp.ne.s32.totalorder %s1308_s25, %s982_s13  ;;  %s987_s15 = sshll.u32 %s1179_s10, 4  ;;  %s988_s15 = int_to_ptr.vmem [resolvable:$false] %s987_s15 }
  0x31   : > { %s989_s11 = scalar_lea.vmem %s988_s15, 64  ;;  %p990_p9 = scmp.lt.s32.totalorder %s1308_s25, %s988_s15 }
  0x32   : > { %p985_p3 = pnand %p983_p1, %p1317_p2  ;;  %p991_p8 = scmp.lt.s32.totalorder %s989_s11, %s982_s13 }
  0x34   : > { %p986_p11 = pneg %p985_p3  ;;  %p992_p5 = por %p991_p8, %p990_p9 }
  0x36   : > { %p993_p6 = pnand %p992_p5, %p986_p11 }
  0x38   : > { %996 = shalt.err (!%p993_p6)
}
  0x39   : > { %902 = dma.hbm_to_vmem [thread:$0]  (!%p1293_p0), %s1303_s16, 32, %s1308_s25, %s1311_s29  }
  0x3a   : > { %p871_p12 = scmp.ge.s32.totalorder %s1177_s23, 1  ;;  %p299_p4 = scmp.lt.s32.totalorder %s1177_s23, 3 }
  0x3b   : > { %s1668_s27 = sshll.u32 %s1173_s22, 5  ;;  %s1669_s15 = sshll.u32 %s1287_s9, 1 }
  0x3c   : > { %p1343_p7 = pnand %p871_p12, %p299_p4  ;;  %s1352_s10 = scalar_lea.hbm %s1641_s0, %s1668_s27 }
  0x3d   : > { %s223_s11 = scalar_lea.vmem [#allocation2], %s1669_s15  ;;  %s1670_s16 = sshll.u32 %s1173_s22, 8 }
  0x3e   : > { %s1667_s26 = scalar_select %p1343_p7, 1, 0 }
  0x3f   : > { %s231_s28 = sshll.u32 %s223_s11, 4  ;;  %s1363_s7 = scalar_lea.hbm %s1643_s2, %s1670_s16  ;;  %s1356_s28 = int_to_ptr.vmem [resolvable:$true] %s231_s28 }
  0x40   : > { %s220_s20 = scalar_lea.sflag [#allocation3], %s1287_s9  ;;  %s997_s23 = scalar_lea.hbm %s1352_s10, 32 }
  0x41   : > { %p998_p8 = scmp.ne.s32.totalorder %s1352_s10, %s997_s23  ;;  %s1002_s13 = scalar_lea.hbm %s1641_s0, 64 }
  0x42   : > { %p1003_p10 = scmp.lt.u32.totalorder %s1352_s10, %s1641_s0  ;;  %p1004_p13 = scmp.lt.u32.totalorder %s1002_s13, %s997_s23 }
  0x43   : > { %p1000_p9 = pnand %p998_p8, %p1317_p2  ;;  %p1006_p3 = scmp.lt.u32.totalorder %s997_s23, %s1352_s10 }
  0x44   : > { %p1005_p1 = por %p1004_p13, %p1003_p10 }
  0x45   : > { %p1001_p11 = pneg %p1000_p9 }
  0x46   : > { %p1007_p5 = por %p1006_p3, %p1005_p1 }
  0x48   : > { %p1008_p6 = pnand %p1007_p5, %p1001_p11 }
  0x4a   : > { %1011 = shalt.err (!%p1008_p6)
}
  0x4b   : > { %s1012_s1 = scalar_lea.vmem %s1356_s28, 32  ;;  %s1180_s16 = smov [#allocation2]  }
  0x4c   : > { %p1013_p12 = scmp.ne.s32.totalorder %s1356_s28, %s1012_s1  ;;  %s1017_s25 = sshll.u32 %s1180_s16, 4  ;;  %s1018_s25 = int_to_ptr.vmem [resolvable:$false] %s1017_s25 }
  0x4d   : > { %s1019_s27 = scalar_lea.vmem %s1018_s25, 64  ;;  %p1020_p9 = scmp.lt.s32.totalorder %s1356_s28, %s1018_s25 }
  0x4e   : > { %p1015_p4 = pnand %p1013_p12, %p1317_p2  ;;  %p1021_p7 = scmp.lt.s32.totalorder %s1019_s27, %s1012_s1 }
  0x50   : > { %p1016_p8 = pneg %p1015_p4  ;;  %p1022_p10 = por %p1021_p7, %p1020_p9 }
  0x52   : > { %p1023_p13 = pnand %p1022_p10, %p1016_p8 }
  0x54   : > { %1026 = shalt.err (!%p1023_p13)
}
  0x55   : > { %899 = dma.hbm_to_vmem [thread:$0]  (!%p1293_p0), %s1352_s10, 32, %s1356_s28, %s220_s20  }
  0x56   : > { %s1671_s23 = sshll.u32 %s1287_s9, 4  ;;  %s1027_s15 = scalar_lea.hbm %s1363_s7, 256 }
  0x57   : > { %s261_s17 = scalar_lea.vmem [#allocation7], %s1671_s23  ;;  %p1028_p7 = scmp.ne.s32.totalorder %s1363_s7, %s1027_s15 }
  0x58   : > { %s270_s13 = sshll.u32 %s261_s17, 4  ;;  %s1032_s16 = scalar_lea.hbm %s1643_s2, 512  ;;  %s1389_s13 = int_to_ptr.vmem [resolvable:$true] %s270_s13 }
  0x59   : > { %p1030_p11 = pnand %p1028_p7, %p1317_p2  ;;  %p1033_p3 = scmp.lt.u32.totalorder %s1363_s7, %s1643_s2 }
  0x5a   : > { %p1034_p5 = scmp.lt.u32.totalorder %s1032_s16, %s1027_s15  ;;  %p1036_p12 = scmp.lt.u32.totalorder %s1027_s15, %s1363_s7 }
  0x5b   : > { %p1031_p1 = pneg %p1030_p11 }
  0x5c   : > { %p1035_p6 = por %p1034_p5, %p1033_p3 }
  0x5e   : > { %p1037_p4 = por %p1036_p12, %p1035_p6 }
  0x60   : > { %p1038_p8 = pnand %p1037_p4, %p1031_p1 }
  0x62   : > { %1041 = shalt.err (!%p1038_p8)
}
  0x63   : > { %s1042_s20 = scalar_lea.vmem %s1389_s13, 256  ;;  %s1181_s28 = smov [#allocation7]  }
  0x64   : > { %p1043_p9 = scmp.ne.s32.totalorder %s1389_s13, %s1042_s20  ;;  %s1047_s10 = sshll.u32 %s1181_s28, 4  ;;  %s1048_s10 = int_to_ptr.vmem [resolvable:$false] %s1047_s10 }
  0x65   : > { %s1049_s23 = scalar_lea.vmem %s1048_s10, 512  ;;  %p1050_p7 = scmp.lt.s32.totalorder %s1389_s13, %s1048_s10 }
  0x66   : > { %p1045_p10 = pnand %p1043_p9, %p1317_p2  ;;  %p1051_p11 = scmp.lt.s32.totalorder %s1049_s23, %s1042_s20 }
  0x68   : > { %p1046_p13 = pneg %p1045_p10  ;;  %p1052_p3 = por %p1051_p11, %p1050_p7 }
  0x6a   : > { %p1053_p5 = pnand %p1052_p3, %p1046_p13 }
  0x6c   : > { %1056 = shalt.err (!%p1053_p5)
}
  0x6d   : > { %s1182_s17 = smov 128   ;;  %s1183_s15 = smov 8  }
  0x6e   : > { %905 = dma.hbm_to_vmem [thread:$0]  (!%p1293_p0), %s1363_s7, 256, %s1389_s13, %s1311_s29, %s1182_s17, %s1182_s17, %s1183_s15  }
  0x6f   : > { %s1672_s11 = sshll.u32 %s1173_s22, 8  ;;  %s1673_s27 = sshll.u32 %s1287_s9, 4 }
  0x70   : > { %s1421_s25 = scalar_lea.hbm %s1645_s4, %s1672_s11  ;;  %s284_s20 = scalar_lea.vmem [#allocation8], %s1673_s27 }
  0x71   : > { %s291_s28 = sshll.u32 %s284_s20, 4  ;;  %s281_s10 = scalar_lea.sflag [#allocation9], %s1287_s9  ;;  %s1425_s28 = int_to_ptr.vmem [resolvable:$true] %s291_s28 }
  0x72   : > { %s1057_s23 = scalar_lea.hbm %s1421_s25, 256  ;;  %s1062_s13 = scalar_lea.hbm %s1645_s4, 512 }
  0x73   : > { %p1058_p1 = scmp.ne.s32.totalorder %s1421_s25, %s1057_s23  ;;  %p1063_p4 = scmp.lt.u32.totalorder %s1421_s25, %s1645_s4 }
  0x74   : > { %p1064_p8 = scmp.lt.u32.totalorder %s1062_s13, %s1057_s23  ;;  %p1066_p10 = scmp.lt.u32.totalorder %s1057_s23, %s1421_s25 }
  0x75   : > { %p1060_p6 = pnand %p1058_p1, %p1317_p2 }
  0x76   : > { %p1065_p9 = por %p1064_p8, %p1063_p4 }
  0x77   : > { %p1061_p12 = pneg %p1060_p6 }
  0x78   : > { %p1067_p13 = por %p1066_p10, %p1065_p9 }
  0x7a   : > { %p1068_p7 = pnand %p1067_p13, %p1061_p12 }
  0x7c   : > { %1071 = shalt.err (!%p1068_p7)
}
  0x7d   : > { %s1072_s16 = scalar_lea.vmem %s1425_s28, 256  ;;  %s1184_s27 = smov [#allocation8]  }
  0x7e   : > { %p1073_p11 = scmp.ne.s32.totalorder %s1425_s28, %s1072_s16  ;;  %s1077_s20 = sshll.u32 %s1184_s27, 4  ;;  %s1078_s20 = int_to_ptr.vmem [resolvable:$false] %s1077_s20 }
  0x7f   : > { %s1079_s7 = scalar_lea.vmem %s1078_s20, 512  ;;  %p1080_p1 = scmp.lt.s32.totalorder %s1425_s28, %s1078_s20 }
  0x80   : > { %p1075_p3 = pnand %p1073_p11, %p1317_p2  ;;  %p1081_p6 = scmp.lt.s32.totalorder %s1079_s7, %s1072_s16 }
  0x82   : > { %p1076_p5 = pneg %p1075_p3  ;;  %p1082_p4 = por %p1081_p6, %p1080_p1 }
  0x84   : > { %p1083_p8 = pnand %p1082_p4, %p1076_p5 }
  0x86   : > { %1086 = shalt.err (!%p1083_p8)
}
  0x87   : > { %908 = dma.hbm_to_vmem [thread:$0]  (!%p1293_p0), %s1421_s25, 256, %s1425_s28, %s281_s10, %s1182_s17, %s1182_s17, %s1183_s15  }
  0x88   : > { %p1674_p2 = scmp.ne.s32.totalorder %s1667_s26, 0 }
  0x89   : > { %s1457_s14 = sand.u32 (!%p1674_p2), 1, %s1161_s19   ;;  %p1675_p12 = scmp.ne.s32.totalorder (!%p1674_p2), %s1660_s30, 0 }
  0x8a   : > { %303 = sbr.rel (%p1674_p2) target bundleno = 331 (0x14b), region = 40  ;;  %s872_s23 = sshll.u32 (!%p1674_p2), %s1457_s14, 1 }
  0x8b   : > { %s306_s29 = scalar_lea.sflag (!%p1674_p2), [#allocation3], %s1457_s14  ;;  %s309_s12 = scalar_lea.vmem (!%p1674_p2), [#allocation2], %s872_s23 }
  0x91   : > { %1140 = dma.done.wait (%p1675_p12), %s306_s29, 32  }
  0x92   : > { %1142 = vsyncadd (%p1675_p12), %s306_s29, 4294967264  ;;  %s314_s9 = sand.u32 1, %s1249_s24   ;;  %s318_s26 = scalar_lea.vmem [#allocation5], %s872_s23 }
  0x93   : > { %s315_s17 = scalar_lea.sflag [#allocation6], %s314_s9 }
  0x94   : > { %1144 = dma.done.wait (%p1675_p12), %s315_s17, 288  }
  0x95   : > { %1146 = vsyncadd (%p1675_p12), %s315_s17, 4294967008  ;;  %s874_s15 = sshll.u32 %s1457_s14, 4  ;;  %s333_s28 = scalar_lea.sflag [#allocation9], %s1457_s14 }
  0x96   : > { %s1471_s25 = scalar_lea.vmem [#allocation7], %s874_s15  ;;  %s1474_s10 = scalar_lea.vmem [#allocation8], %s874_s15 }
  0x97   : > { %1148 = dma.done.wait (%p1675_p12), %s333_s28, 256  }
  0x98   : > { %1150 = vsyncadd (%p1675_p12), %s333_s28, 4294967040  ;;  %v387_v0 = vlaneseq  ;;  %v381_v4 = vld [vmem:[%s318_s26] sm:$0x3]  ;;  %v380_v5 = vld [vmem:[%s309_s12] sm:$0x3]  ;;  %s876_s13 = sshll.u32 %s1457_s14, 5 }
  0x99   : > { %v382_v12 = vld [vmem:[%s1471_s25] sm:$0xff]  ;;  %v1496_v13 = vld [vmem:[%s1644_s3] ss:$0 sm:$0xff]  ;;  %s1572_s11 = scalar_lea.vmem [#allocation10], %s876_s13  ;;  %s885_s1 = sshll.u32 %s1169_s21, 9 }
  0x9a   : > { %v1480_v1 = vshrl.u32 %v387_v0, 7  ;;  %v383_v48 = vld [vmem:[%s1471_s25 + $0x8] sm:$0xff]  ;;  %s702_s16 = sshll.u32 %s1572_s11, 4  ;;  %s1588_s7 = scalar_lea.hbm %s1646_s5, %s885_s1  ;;  %s1590_s16 = int_to_ptr.vmem [resolvable:$true] %s702_s16 }
  0x9b   : > { %s686_s23 = scalar_lea.sflag [#allocation4], %s1457_s14  ;;  %s1087_s29 = scalar_lea.vmem %s1590_s16, 512 }
  0x9c   : > { %v1483_v2 = vsub.s32 0, %v1480_v1  ;;  %v1486_v3 = vsub.s32 1, %v1480_v1  ;;  %v523_v14 = vsub.s32 2, %v1480_v1  ;;  %v551_v15 = vsub.s32 3, %v1480_v1  ;;  %p1088_p0 = scmp.ne.s32.totalorder %s1590_s16, %s1087_s29  ;;  %p1676_p9 = scmp.ne.s32.totalorder %s1661_s6, 0 }
  0x9d   : > { %v579_v16 = vsub.s32 4, %v1480_v1  ;;  %v607_v17 = vsub.s32 5, %v1480_v1  ;;  %v635_v18 = vsub.s32 6, %v1480_v1  ;;  %v663_v19 = vsub.s32 7, %v1480_v1  ;;  %s1185_s21 = smov [#allocation10]  }
  0x9e   : > { %v418_v6 = vrot.slane %v381_v4, %v1483_v2  ;;  %v390_v7 = vrot.slane %v380_v5, %v1483_v2  ;;  %v397_v8 = vrot.slane %v380_v5, %v1486_v3  ;;  %v429_v9 = vrot.slane %v381_v4, %v1486_v3  ;;  %p1089_p10 = pnand %p1088_p0, %p1676_p9  ;;  %s1091_s12 = sshll.u32 %s1185_s21, 4  ;;  %s1092_s12 = int_to_ptr.vmem [resolvable:$false] %s1091_s12 }
  0x9f   : > { %s1093_s9 = scalar_lea.vmem %s1092_s12, 1024  ;;  %p1094_p7 = scmp.lt.s32.totalorder %s1590_s16, %s1092_s12 }
  0xa0   : > { %420 = vbcast.lane.b32.xlu1 %v418_v6, 256  ;;  %392 = vbcast.lane.b32.xlu0 %v390_v7, 256  ;;  %p1090_p13 = pneg %p1089_p10  ;;  %p1095_p11 = scmp.lt.s32.totalorder %s1093_s9, %s1087_s29 }
  0xa2   : > { %p1096_p3 = por %p1095_p11, %p1094_p7 }
  0xa4   : > { %424 = vbcast.lane.b32.xlu1 %v418_v6, 264  ;;  %399 = vbcast.lane.b32.xlu0 %v397_v8, 256  ;;  %v1556_v6 = vld [vmem:[%s1474_s10] sm:$0xff]  ;;  %p1097_p5 = pnand %p1096_p3, %p1090_p13 }
  0xa8   : > { %435 = vbcast.lane.b32.xlu1 %v429_v9, 264  ;;  %431 = vbcast.lane.b32.xlu0 %v429_v9, 256 }
 0x112   : > { %v421_v10 = vpop.permute.xlu1 %420  ;;  %v393_v11 = vpop.permute.xlu0 %392 }
 0x113   : > { %vm437_vm0 = vcmp.lt.s32.totalorder %v421_v10, 8  ;;  %vm401_vm1 = vcmp.eq.s32.totalorder %v393_v11, 1  ;;  %vm453_vm2 = vcmp.eq.s32.totalorder %v421_v10, 0  ;;  %vm481_vm3 = vcmp.eq.s32.totalorder %v421_v10, 1 }
 0x114   : > { %v413_v20 = vsel %vm401_vm1, %v382_v12, %v1496_v13  ;;  %v449_v21 = vsel %vm437_vm0, 0.0, %v1496_v13  ;;  %vm509_vm4 = vcmp.eq.s32.totalorder %v421_v10, 2  ;;  %vm537_vm5 = vcmp.eq.s32.totalorder %v421_v10, 3 }
 0x115   : > { %v468_v22 = vrot.slane %v413_v20, %v1483_v2  ;;  %v496_v23 = vrot.slane %v413_v20, %v1486_v3  ;;  %vm565_vm6 = vcmp.eq.s32.totalorder %v421_v10, 4  ;;  %vm593_vm7 = vcmp.eq.s32.totalorder %v421_v10, 5 }
 0x116   : > { %vm621_vm8 = vcmp.eq.s32.totalorder %v421_v10, 6  ;;  %v1508_v24 = vpop.permute.xlu1 %424  ;;  %vm649_vm9 = vcmp.eq.s32.totalorder %v421_v10, 7  ;;  %v524_v26 = vrot.slane %v413_v20, %v523_v14  ;;  %v552_v27 = vrot.slane %v413_v20, %v551_v15  ;;  %v400_v42 = vpop.permute.xlu0 %399 }
 0x117   : > { %v473_v25 = vsel %vm453_vm2, %v468_v22, 0.0  ;;  %v580_v29 = vrot.slane %v413_v20, %v579_v16  ;;  %v608_v30 = vrot.slane %v413_v20, %v607_v17  ;;  %v636_v31 = vrot.slane %v413_v20, %v635_v18 }
 0x118   : > { %v477_v28 = vadd.f32 %v473_v25, %v449_v21  ;;  %v501_v32 = vsel %vm481_vm3, %v496_v23, 0.0  ;;  %vm438_vm10 = vcmp.lt.s32.totalorder %v1508_v24, 8  ;;  %vm454_vm11 = vcmp.eq.s32.totalorder %v1508_v24, 0 }
 0x119   : > { %vm482_vm12 = vcmp.eq.s32.totalorder %v1508_v24, 1  ;;  %v664_v34 = vrot.slane %v413_v20, %v663_v19  ;;  %v450_v35 = vsel %vm438_vm10, 0.0, %v1496_v13  ;;  %v474_v36 = vsel %vm454_vm11, %v468_v22, 0.0 }
 0x11a   : > { %v505_v33 = vadd.f32 %v501_v32, %v477_v28  ;;  %v529_v37 = vsel %vm509_vm4, %v524_v26, 0.0  ;;  %v478_v38 = vadd.f32 %v474_v36, %v450_v35  ;;  %vm510_vm13 = vcmp.eq.s32.totalorder %v1508_v24, 2  ;;  %v1532_v43 = vpop.permute.xlu1 %435 }
 0x11b   : > { %vm538_vm14 = vcmp.eq.s32.totalorder %v1508_v24, 3  ;;  %v557_v40 = vsel %vm537_vm5, %v552_v27, 0.0  ;;  %v502_v41 = vsel %vm482_vm12, %v496_v23, 0.0  ;;  %vm566_vm15 = vcmp.eq.s32.totalorder %v1508_v24, 4 }
 0x11c   : > { %v533_v39 = vadd.f32 %v529_v37, %v505_v33  ;;  %v585_v44 = vsel %vm565_vm6, %v580_v29, 0.0  ;;  %v613_v45 = vsel %vm593_vm7, %v608_v30, 0.0  ;;  %v641_v46 = vsel %vm621_vm8, %v636_v31, 0.0 }
 0x11d   : > { %v506_v47 = vadd.f32 %v502_v41, %v478_v38  ;;  %v669_v50 = vsel %vm649_vm9, %v664_v34, 0.0  ;;  %v530_v51 = vsel %vm510_vm13, %v524_v26, 0.0  ;;  %v558_v52 = vsel %vm538_vm14, %v552_v27, 0.0  ;;  %v386_v26 = vld [vmem:[%s1474_s10 + $0x8] sm:$0xff] }
 0x11e   : > { %v561_v49 = vadd.f32 %v557_v40, %v533_v39  ;;  %v586_v54 = vsel %vm566_vm15, %v580_v29, 0.0  ;;  %vm402_vm0 = vcmp.eq.s32.totalorder %v400_v42, 1  ;;  %vm440_vm1 = vcmp.lt.s32.totalorder %v1532_v43, 8 }
 0x11f   : > { %v534_v53 = vadd.f32 %v530_v51, %v506_v47  ;;  %vm594_vm2 = vcmp.eq.s32.totalorder %v1508_v24, 5  ;;  %v414_v56 = vsel %vm402_vm0, %v383_v48, %v1496_v13  ;;  %vm456_vm3 = vcmp.eq.s32.totalorder %v1532_v43, 0 }
 0x120   : > { %v589_v55 = vadd.f32 %v585_v44, %v561_v49  ;;  %v472_v58 = vrot.slane %v414_v56, %v1483_v2  ;;  %v500_v59 = vrot.slane %v414_v56, %v1486_v3  ;;  %v452_v60 = vsel %vm440_vm1, 0.0, %v1496_v13 }
 0x121   : > { %v562_v57 = vadd.f32 %v558_v52, %v534_v53  ;;  %vm622_vm4 = vcmp.eq.s32.totalorder %v1508_v24, 6  ;;  %vm650_vm5 = vcmp.eq.s32.totalorder %v1508_v24, 7  ;;  %vm484_vm6 = vcmp.eq.s32.totalorder %v1532_v43, 1 }
 0x122   : > { %v617_v61 = vadd.f32 %v613_v45, %v589_v55  ;;  %v614_v63 = vsel %vm594_vm2, %v608_v30, 0.0  ;;  %v528_v0 = vrot.slane %v414_v56, %v523_v14  ;;  %v476_v4 = vsel %vm456_vm3, %v472_v58, 0.0 }
 0x123   : > { %v590_v62 = vadd.f32 %v586_v54, %v562_v57  ;;  %v556_v2 = vrot.slane %v414_v56, %v551_v15  ;;  %v480_v3 = vadd.f32 %v476_v4, %v452_v60  ;;  %vm512_vm7 = vcmp.eq.s32.totalorder %v1532_v43, 2  ;;  %v432_v15 = vpop.permute.xlu0 %431 }
 0x124   : > { %v645_v5 = vadd.f32 %v641_v46, %v617_v61  ;;  %v642_v8 = vsel %vm622_vm4, %v636_v31, 0.0  ;;  %v504_v9 = vsel %vm484_vm6, %v500_v59, 0.0  ;;  %vm540_vm8 = vcmp.eq.s32.totalorder %v1532_v43, 3 }
 0x125   : > { %v618_v7 = vadd.f32 %v614_v63, %v590_v62  ;;  %v670_v11 = vsel %vm650_vm5, %v664_v34, 0.0  ;;  %v584_v12 = vrot.slane %v414_v56, %v579_v16  ;;  %v508_v14 = vadd.f32 %v504_v9, %v480_v3 }
 0x126   : > { %v673_v10 = vadd.f32 %v669_v50, %v645_v5  ;;  %v612_v21 = vrot.slane %v414_v56, %v607_v17  ;;  %v640_v22 = vrot.slane %v414_v56, %v635_v18  ;;  %v532_v23 = vsel %vm512_vm7, %v528_v0, 0.0 }
 0x127   : > { %v646_v20 = vadd.f32 %v642_v8, %v618_v7  ;;  %v536_v27 = vadd.f32 %v532_v23, %v508_v14  ;;  %v560_v28 = vsel %vm540_vm8, %v556_v2, 0.0  ;;  %vm568_vm9 = vcmp.eq.s32.totalorder %v1532_v43, 4 }
 0x128   : > { %v677_v25 = vadd.f32 %v673_v10, %v1556_v6  ;;  %vm596_vm10 = vcmp.eq.s32.totalorder %v1532_v43, 5  ;;  %vm439_vm11 = vcmp.lt.s32.totalorder %v432_v15, 8  ;;  %vm455_vm12 = vcmp.eq.s32.totalorder %v432_v15, 0 }
 0x129   : > { %v674_v24 = vadd.f32 %v670_v11, %v646_v20  ;;  %v564_v16 = vadd.f32 %v560_v28, %v536_v27  ;;  %v451_v29 = vsel %vm439_vm11, 0.0, %v1496_v13  ;;  %v475_v17 = vsel %vm455_vm12, %v472_v58, 0.0 }
 0x12a   : > { %vm483_vm13 = vcmp.eq.s32.totalorder %v432_v15, 1  ;;  %681 = vst [vmem:[%s1572_s11] sm:$0xff] %v677_v25  ;;  %v588_v18 = vsel %vm568_vm9, %v584_v12, 0.0  ;;  %v479_v31 = vadd.f32 %v475_v17, %v451_v29  ;;  %vm511_vm14 = vcmp.eq.s32.totalorder %v432_v15, 2 }
 0x12b   : > { %v678_v30 = vadd.f32 %v674_v24, %v386_v26  ;;  %v592_v32 = vadd.f32 %v588_v18, %v564_v16  ;;  %vm624_vm15 = vcmp.eq.s32.totalorder %v1532_v43, 6  ;;  %v503_v33 = vsel %vm483_vm13, %v500_v59, 0.0 }
 0x12c   : > { %v668_v34 = vrot.slane %v414_v56, %v663_v19  ;;  %v616_v13 = vsel %vm596_vm10, %v612_v21, 0.0  ;;  %v507_v35 = vadd.f32 %v503_v33, %v479_v31  ;;  %vm539_vm0 = vcmp.eq.s32.totalorder %v432_v15, 3 }
 0x12d   : > { %682 = vst [vmem:[%s1572_s11 + $0x8] sm:$0xff] %v678_v30  ;;  %v620_v36 = vadd.f32 %v616_v13, %v592_v32  ;;  %vm652_vm1 = vcmp.eq.s32.totalorder %v1532_v43, 7  ;;  %v531_v37 = vsel %vm511_vm14, %v528_v0, 0.0  ;;  %v644_v38 = vsel %vm624_vm15, %v640_v22, 0.0 }
 0x12e   : > { %v535_v39 = vadd.f32 %v531_v37, %v507_v35  ;;  %vm567_vm2 = vcmp.eq.s32.totalorder %v432_v15, 4  ;;  %v559_v41 = vsel %vm539_vm0, %v556_v2, 0.0  ;;  %v672_v1 = vsel %vm652_vm1, %v668_v34, 0.0 }
 0x12f   : > { %v648_v40 = vadd.f32 %v644_v38, %v620_v36  ;;  %vm595_vm3 = vcmp.eq.s32.totalorder %v432_v15, 5  ;;  %v587_v44 = vsel %vm567_vm2, %v584_v12, 0.0  ;;  %vm623_vm4 = vcmp.eq.s32.totalorder %v432_v15, 6 }
 0x130   : > { %v563_v19 = vadd.f32 %v559_v41, %v535_v39  ;;  %v615_v43 = vsel %vm595_vm3, %v612_v21, 0.0  ;;  %vm651_vm5 = vcmp.eq.s32.totalorder %v432_v15, 7  ;;  %v643_v48 = vsel %vm623_vm4, %v640_v22, 0.0 }
 0x131   : > { %v676_v42 = vadd.f32 %v672_v1, %v648_v40  ;;  %v671_v50 = vsel %vm651_vm5, %v668_v34, 0.0 }
 0x132   : > { %v591_v45 = vadd.f32 %v587_v44, %v563_v19 }
 0x133   : > { %v680_v46 = vadd.f32 %v676_v42, %v386_v26 }
 0x134   : > { %v619_v47 = vadd.f32 %v615_v43, %v591_v45 }
 0x135   : > { %684 = vst [vmem:[%s1572_s11 + $0x18] sm:$0xff] %v680_v46 }
 0x136   : > { %v647_v49 = vadd.f32 %v643_v48, %v619_v47 }
 0x138   : > { %v675_v51 = vadd.f32 %v671_v50, %v647_v49 }
 0x13a   : > { %v679_v52 = vadd.f32 %v675_v51, %v1556_v6 }
 0x13c   : > { %683 = vst [vmem:[%s1572_s11 + $0x10] sm:$0xff] %v679_v52 }
 0x13d   : > { %1100 = shalt.err (!%p1097_p5)
}
 0x13e   : > { %s1101_s17 = scalar_lea.hbm %s1588_s7, 512  ;;  %s1105_s25 = scalar_lea.hbm %s1646_s5, 1024 }
 0x13f   : > { %p1102_p1 = scmp.ne.s32.totalorder %s1588_s7, %s1101_s17  ;;  %p1106_p8 = scmp.lt.u32.totalorder %s1588_s7, %s1646_s5 }
 0x140   : > { %p1107_p2 = scmp.lt.u32.totalorder %s1105_s25, %s1101_s17  ;;  %p1109_p0 = scmp.lt.u32.totalorder %s1101_s17, %s1588_s7 }
 0x141   : > { %p1103_p6 = pnand %p1102_p1, %p1676_p9 }
 0x142   : > { %p1108_p12 = por %p1107_p2, %p1106_p8 }
 0x143   : > { %p1104_p4 = pneg %p1103_p6 }
 0x144   : > { %p1110_p10 = por %p1109_p0, %p1108_p12 }
 0x146   : > { %p1111_p13 = pnand %p1110_p10, %p1104_p4 }
 0x148   : > { %1114 = shalt.err (!%p1111_p13)
}
 0x149   : > { %s1186_s24 = smov 128   ;;  %s1187_s30 = smov 8  }
 0x14a   : > { %894 = dma.vmem_to_hbm [thread:$0]  (%p1676_p9), %s1590_s16, 512, %s1588_s7, %s686_s23, %s1186_s24, %s1186_s24, %s1187_s30  }
 0x14b PF: > { %s1677_s13 = sld [smem:[#allocation16_spill]]  ;;  %s717_s11 = sand.u32 1, %s1157_s18  }
 0x14c   : > { %p1678_p7 = scmp.ne.s32.totalorder %s1663_s8, 0  ;;  %s718_s1 = scalar_lea.sflag [#allocation4], %s717_s11 }
 0x151   : > { %p1679_p11 = scmp.ge.s32.totalorder %s1677_s13, 2 }
 0x153   : > { %p910_p3 = pnand %p1679_p11, %p1678_p7 }
 0x155   : > { %1152 = dma.done.wait (!%p910_p3), %s718_s1, 512  }
 0x156   : > { %1154 = vsyncadd (!%p910_p3), %s718_s1, 4294966784  ;;  %s27_s23 = sadd.s32 1, %s1677_s13   ;;  %s1680_s27 = sld [smem:[#allocation15_spill]] }
 0x157   : > { %p24_p5 = scmp.ge.s32.totalorder %s27_s23, 4   ;;  %s1681_s20 = sld [smem:[#allocation18_spill]] }
 0x158   : > { %s1682_s6 = sld [smem:[#allocation17_spill]]  ;;  %s1683_s18 = smov %s1161_s19 }
 0x159   : > { %s1685_s21 = smov %s1173_s22  ;;  %26 = sbr.rel (!%p24_p5) target bundleno = 12 (0xc), region = 122 }
 0x15c   : > { %s1684_s19 = smov %s1680_s27 }
 0x15e   : > { %s1686_s22 = smov %s1682_s6 }
 0x160   :  { %723 = vsyncpa [#allocation3], 1 }
 0x161   :  { %725 = vsyncpa [#allocation3 + $0x1], 1 }
 0x162   :  { %726 = vsyncpa [#allocation6], 1 }
 0x163   :  { %728 = vsyncpa [#allocation6 + $0x1], 1 }
 0x164   :  { %729 = vsyncpa [#allocation9], 1 }
 0x165   :  { %731 = vsyncpa [#allocation9 + $0x1], 1 }
 0x166   :  { %732 = vsyncpa [#allocation4], 1 }
 0x167   :  { %734 = vsyncpa [#allocation4 + $0x1], 1 }

</bundles_post_ra>
